<compile_context>
chip_gen: v5e
topology: v5e:2x2
jax: 0.10.0
libtpu: 0.0.40
codegen_flags: <defaults>
</compile_context>

<pallas_src>
import jax
import jax.numpy as jnp
from jax.experimental import pallas as pl
from jax.experimental.pallas import tpu as pltpu


def _make_graphconv_kernel(k):
    """Kernel for static k >= 2.  The Chebyshev recursion is unrolled in Python
    (k is a hyper-parameter known at trace time).

    Refs (all in the batch-second layout so the recursion needs no per-step transpose):
      x_ref    : (N, b_tile, C_in)
      lap_ref  : (N, N)              shared across the batch
      w_ref    : (k-1, C_in, C_out)  kk-major weight slices for terms kk = 1..k-1
      bias_ref : (1, C_out)          ones-term (T_0) folded bias
      o_ref    : (N, b_tile, C_out)
    """

    def kernel(x_ref, lap_ref, w_ref, bias_ref, o_ref):
        x = x_ref[...].astype(jnp.float32)                  # (N, bt, C_in)
        lap = lap_ref[...].astype(jnp.float32)               # (N, N)
        n, bt, _ = x.shape
        c_out = o_ref.shape[-1]

        def lap_mm(t):
            # Single 2-D MXU matmul per recursion step: (N,N) @ (N, bt*C_in).
            return jnp.einsum("nm,mbc->nbc", lap, t,
                              preferred_element_type=jnp.float32)

        def contract(t, idx):
            # (N*bt, C_in) @ (C_in, C_out): one small matmul per Chebyshev term.
            return jnp.einsum("nbc,co->nbo", t, w_ref[idx],
                              preferred_element_type=jnp.float32)

        # Accumulator seeded with the ones-term bias: folds T_0 and the bias add.
        acc = jnp.broadcast_to(bias_ref[...].reshape(1, 1, c_out), (n, bt, c_out))

        if k == 2:
            # Reference: terms are [ones, lap @ x].
            acc = acc + contract(lap_mm(x), 0)
        else:
            # Reference (k >= 3): terms are [ones, x, lap@x, 2*lap@T - T_prev, ...].
            tkm1 = x
            tk = lap_mm(x)
            acc = acc + contract(tkm1, 0)
            acc = acc + contract(tk, 1)
            for kk in range(3, k):
                tkm2, tkm1 = tkm1, tk
                tk = 2.0 * lap_mm(tkm1) - tkm2               # combine kept in f32
                acc = acc + contract(tk, kk - 1)

        o_ref[...] = acc.astype(o_ref.dtype)

    return kernel


def init_graph_conv_params(weight, k, c_in, c_out):
    """Pure function of the static parameter layout -- run ONCE at model-init time.

    weight: (k*C_in, C_out) with flat row index c*k + kk (the reference's flatten order).
    Returns:
      w_rest: (k-1, C_in, C_out) weight slices for terms kk = 1..k-1 (None if k == 1)
      bias:   (1, C_out) == ones(N, C_in) @ W[kk=0] row-collapsed (T_0 term folded)
    """
    w_kco = jnp.transpose(weight.reshape(c_in, k, c_out), (1, 0, 2))   # [kk, c, :]
    bias = jnp.sum(w_kco[0], axis=0, keepdims=True)                    # (1, C_out)
    if k == 1:
        return None, bias
    return w_kco[1:], bias                                             # (k-1, C_in, C_out)


def graph_conv(x, lap, w_rest, bias, k, b_tile=None):
    """x: (B, N, C_in) f32, lap: (N, N) f32 (shared over the batch),
    w_rest/bias from init_graph_conv_params.  Returns (B, N, C_out)."""
    b, n, c_in = x.shape
    c_out = bias.shape[-1]

    if k == 1:
        # Output does not depend on x: skip the kernel launch entirely.
        return jnp.broadcast_to(bias[None], (b, n, c_out)).astype(x.dtype)

    # One wrapper-side transpose so the in-kernel recursion is a plain 2-D matmul.
    x_nbc = jnp.transpose(x, (1, 0, 2))                                # (N, B, C_in)

    if b_tile is None:
        # Tile the batch only once it is big enough for pipelining / megacore to pay off
        # (tile must be a multiple of 8 because it is the sublane dim of the x/out blocks).
        b_tile = b
        for cand in (64, 32, 16, 8):
            if b >= 2 * cand and b % cand == 0:
                b_tile = cand
                break
    num_tiles = b // b_tile
    sem = ("parallel",) if num_tiles > 1 else ("arbitrary",)

    out_nbc = pl.pallas_call(
        _make_graphconv_kernel(k),
        out_shape=jax.ShapeDtypeStruct((n, b, c_out), x.dtype),
        grid=(num_tiles,),
        in_specs=[
            pl.BlockSpec((n, b_tile, c_in), lambda i: (0, i, 0)),       # x, tiled over B
            pl.BlockSpec((n, n), lambda i: (0, 0)),                     # lap, resident
            pl.BlockSpec((k - 1, c_in, c_out), lambda i: (0, 0, 0)),    # per-term weights
            pl.BlockSpec((1, c_out), lambda i: (0, 0)),                 # ones-term bias
        ],
        out_specs=pl.BlockSpec((n, b_tile, c_out), lambda i: (0, i, 0)),
        compiler_params=pltpu.CompilerParams(dimension_semantics=sem),
    )(x_nbc, lap, w_rest, bias)

    # Back to the module's (B, N, C_out) layout (cheap XLA transpose, fuses with neighbors).
    return jnp.transpose(out_nbc, (1, 0, 2))


def graph_conv_from_weight(x, lap, weight, k):
    """Convenience wrapper matching the PyTorch call signature.  In a real model,
    init_graph_conv_params runs once at parameter-init time, not per call."""
    _, _, c_in = x.shape
    c_out = weight.shape[1]
    assert weight.shape[0] == k * c_in
    w_rest, bias = init_graph_conv_params(weight, k, c_in, c_out)
    return graph_conv(x, lap, w_rest, bias, k)


def graph_conv_ref(x, lap, weight, k):
    """Pure-JAX reference mirroring the PyTorch code (for validation)."""
    b, n, c_in = x.shape
    t0 = jnp.ones((b, n, c_in), x.dtype)
    if k == 1:
        terms = [t0]
    elif k == 2:
        terms = [t0, jnp.einsum("nm,bmc->bnc", lap, x)]
    else:
        tkm1 = x
        tk = jnp.einsum("nm,bmc->bnc", lap, x)
        terms = [t0, tkm1, tk]
        for _ in range(3, k):
            tkm2, tkm1 = tkm1, tk
            tk = 2.0 * jnp.einsum("nm,bmc->bnc", lap, tkm1) - tkm2
            terms.append(tk)
    cp = jnp.stack(terms, axis=1)                 # (B, k, N, C)
    cp = jnp.transpose(cp, (0, 2, 3, 1))          # (B, N, C, k)
    cp = cp.reshape(b, n, c_in * k)               # flatten(start_dim=2)
    return jnp.matmul(cp, weight)


if __name__ == "__main__":
    # Small shapes consistent with the module: batch=2, electrodes=16,
    # in_channels=8, out_channels=32, Chebyshev order k=4.
    B, N, C_IN, C_OUT, K = 2, 16, 8, 32, 4

    key = jax.random.PRNGKey(0)
    kx, kl, kw = jax.random.split(key, 3)

    x = jax.random.normal(kx, (B, N, C_IN), dtype=jnp.float32)

    # Symmetric "laplacian-like" matrix, shared across the batch.
    a = jax.random.normal(kl, (N, N), dtype=jnp.float32)
    lap = 0.5 * (a + a.T) / N

    # Xavier-uniform init for weight (k*C_in, C_out), as nn.init.xavier_uniform_.
    fan_in, fan_out = K * C_IN, C_OUT
    bound = (6.0 / (fan_in + fan_out)) ** 0.5
    weight = jax.random.uniform(kw, (K * C_IN, C_OUT), dtype=jnp.float32,
                                minval=-bound, maxval=bound)

    # --- k = 4 path (parameters prepared once, outside the per-call path) ---
    w_rest, bias = init_graph_conv_params(weight, K, C_IN, C_OUT)
    out = jax.block_until_ready(graph_conv(x, lap, w_rest, bias, K))
    ref = graph_conv_ref(x, lap, weight, K)
    assert out.shape == (B, N, C_OUT)
    assert jnp.allclose(out, ref, atol=1e-4, rtol=1e-4), "mismatch vs reference (k=4)"

    # --- k = 2 path ---
    w2 = weight[: 2 * C_IN]
    out2 = jax.block_until_ready(graph_conv_from_weight(x, lap, w2, 2))
    ref2 = graph_conv_ref(x, lap, w2, 2)
    assert jnp.allclose(out2, ref2, atol=1e-4, rtol=1e-4), "mismatch vs reference (k=2)"

    # --- k = 1 short-circuit path (x-independent, no kernel launch) ---
    w1 = weight[:C_IN]
    out1 = jax.block_until_ready(graph_conv_from_weight(x, lap, w1, 1))
    ref1 = graph_conv_ref(x, lap, w1, 1)
    assert jnp.allclose(out1, ref1, atol=1e-4, rtol=1e-4), "mismatch vs reference (k=1)"

    print("KERNEL_OK")
</pallas_src>

<mosaic_0001>
module attributes {stable_mosaic.version = 11 : i64} {
  func.func @kernel(%arg0: i32, %arg1: memref<16x2x8xf32, #tpu.memory_space<vmem>>, %arg2: memref<16x16xf32, #tpu.memory_space<vmem>>, %arg3: memref<3x8x32xf32, #tpu.memory_space<vmem>>, %arg4: memref<1x32xf32, #tpu.memory_space<vmem>>, %arg5: memref<16x2x32xf32, #tpu.memory_space<vmem>>) attributes {dimension_semantics = [#tpu.dimension_semantics<arbitrary>], iteration_bounds = array<i64: 1>, scalar_prefetch = 0 : i64, scratch_operands = 0 : i64, tpu.core_type = #tpu.core_type<tc>, window_params = [{transform_indices = @transform_0, window_bounds = array<i64: 16, 2, 8>}, {pipeline_mode = #tpu.pipeline_mode<synchronous>, transform_indices = @transform_1, window_bounds = array<i64: 16, 16>}, {pipeline_mode = #tpu.pipeline_mode<synchronous>, transform_indices = @transform_2, window_bounds = array<i64: 3, 8, 32>}, {pipeline_mode = #tpu.pipeline_mode<synchronous>, transform_indices = @transform_3, window_bounds = array<i64: 1, 32>}, {transform_indices = @transform_4, window_bounds = array<i64: 16, 2, 32>}]} {
    %c0 = arith.constant 0 : index
    %c0_0 = arith.constant 0 : index
    %c0_1 = arith.constant 0 : index
    %0 = vector.load %arg1[%c0, %c0_0, %c0_1] : memref<16x2x8xf32, #tpu.memory_space<vmem>>, vector<16x2x8xf32>
    %c0_2 = arith.constant 0 : index
    %c0_3 = arith.constant 0 : index
    %1 = vector.load %arg2[%c0_2, %c0_3] : memref<16x16xf32, #tpu.memory_space<vmem>>, vector<16x16xf32>
    %c0_4 = arith.constant 0 : index
    %c0_5 = arith.constant 0 : index
    %2 = vector.load %arg4[%c0_4, %c0_5] : memref<1x32xf32, #tpu.memory_space<vmem>>, vector<1x32xf32>
    %3 = vector.shape_cast %2 : vector<1x32xf32> to vector<1x1x32xf32>
    %4 = vector.shape_cast %3 : vector<1x1x32xf32> to vector<1x1x32xf32>
    %5 = vector.broadcast %4 : vector<1x1x32xf32> to vector<16x2x32xf32>
    "tpu.trace_start"() <{level = 10 : i32, message = "nm,mbc->nbc"}> : () -> ()
    %cst = arith.constant dense<0.000000e+00> : vector<16x2x8xf32>
    %6 = tpu.matmul %1, %0, %cst {dimension_numbers = #tpu.dot_dimension_numbers<[1], [0], [0], [1, 2], [0, 0, 1, 1, 1, 2], [], []>} : vector<16x16xf32>, vector<16x2x8xf32>, vector<16x2x8xf32> -> vector<16x2x8xf32>
    "tpu.trace_stop"() : () -> ()
    %c0_6 = arith.constant 0 : index
    %c0_7 = arith.constant 0 : index
    %c0_8 = arith.constant 0 : index
    %7 = vector.load %arg3[%c0_6, %c0_7, %c0_8] : memref<3x8x32xf32, #tpu.memory_space<vmem>>, vector<1x8x32xf32>
    %8 = vector.shape_cast %7 : vector<1x8x32xf32> to vector<8x32xf32>
    "tpu.trace_start"() <{level = 10 : i32, message = "nbc,co->nbo"}> : () -> ()
    %cst_9 = arith.constant dense<0.000000e+00> : vector<16x2x32xf32>
    %9 = tpu.matmul %0, %8, %cst_9 {dimension_numbers = #tpu.dot_dimension_numbers<[2], [0], [0, 1], [1], [0, 0, 0, 1, 1, 1], [], []>} : vector<16x2x8xf32>, vector<8x32xf32>, vector<16x2x32xf32> -> vector<16x2x32xf32>
    "tpu.trace_stop"() : () -> ()
    %10 = arith.addf %5, %9 : vector<16x2x32xf32>
    %c1 = arith.constant 1 : index
    %c0_10 = arith.constant 0 : index
    %c0_11 = arith.constant 0 : index
    %11 = vector.load %arg3[%c1, %c0_10, %c0_11] : memref<3x8x32xf32, #tpu.memory_space<vmem>>, vector<1x8x32xf32>
    %12 = vector.shape_cast %11 : vector<1x8x32xf32> to vector<8x32xf32>
    "tpu.trace_start"() <{level = 10 : i32, message = "nbc,co->nbo"}> : () -> ()
    %cst_12 = arith.constant dense<0.000000e+00> : vector<16x2x32xf32>
    %13 = tpu.matmul %6, %12, %cst_12 {dimension_numbers = #tpu.dot_dimension_numbers<[2], [0], [0, 1], [1], [0, 0, 0, 1, 1, 1], [], []>} : vector<16x2x8xf32>, vector<8x32xf32>, vector<16x2x32xf32> -> vector<16x2x32xf32>
    "tpu.trace_stop"() : () -> ()
    %14 = arith.addf %10, %13 : vector<16x2x32xf32>
    "tpu.trace_start"() <{level = 10 : i32, message = "nm,mbc->nbc"}> : () -> ()
    %cst_13 = arith.constant dense<0.000000e+00> : vector<16x2x8xf32>
    %15 = tpu.matmul %1, %6, %cst_13 {dimension_numbers = #tpu.dot_dimension_numbers<[1], [0], [0], [1, 2], [0, 0, 1, 1, 1, 2], [], []>} : vector<16x16xf32>, vector<16x2x8xf32>, vector<16x2x8xf32> -> vector<16x2x8xf32>
    "tpu.trace_stop"() : () -> ()
    %cst_14 = arith.constant 2.000000e+00 : f32
    %16 = vector.broadcast %cst_14 : f32 to vector<16x2x8xf32>
    %17 = arith.mulf %16, %15 : vector<16x2x8xf32>
    %18 = arith.subf %17, %0 : vector<16x2x8xf32>
    %c2 = arith.constant 2 : index
    %c0_15 = arith.constant 0 : index
    %c0_16 = arith.constant 0 : index
    %19 = vector.load %arg3[%c2, %c0_15, %c0_16] : memref<3x8x32xf32, #tpu.memory_space<vmem>>, vector<1x8x32xf32>
    %20 = vector.shape_cast %19 : vector<1x8x32xf32> to vector<8x32xf32>
    "tpu.trace_start"() <{level = 10 : i32, message = "nbc,co->nbo"}> : () -> ()
    %cst_17 = arith.constant dense<0.000000e+00> : vector<16x2x32xf32>
    %21 = tpu.matmul %18, %20, %cst_17 {dimension_numbers = #tpu.dot_dimension_numbers<[2], [0], [0, 1], [1], [0, 0, 0, 1, 1, 1], [], []>} : vector<16x2x8xf32>, vector<8x32xf32>, vector<16x2x32xf32> -> vector<16x2x32xf32>
    "tpu.trace_stop"() : () -> ()
    %22 = arith.addf %14, %21 : vector<16x2x32xf32>
    %c0_18 = arith.constant 0 : index
    %c0_19 = arith.constant 0 : index
    %c0_20 = arith.constant 0 : index
    %23 = vector.load %arg5[%c0_18, %c0_19, %c0_20] : memref<16x2x32xf32, #tpu.memory_space<vmem>>, vector<16x2x32xf32>
    tpu.vector_store %arg5[%c0_18, %c0_19, %c0_20], %22 {strides = array<i32>} : memref<16x2x32xf32, #tpu.memory_space<vmem>>, vector<16x2x32xf32>,
    return
  }
  func.func @transform_0(%arg0: i32) -> (i32, i32, i32) {
    %c0_i32 = arith.constant 0 : i32
    %c0_i32_0 = arith.constant 0 : i32
    %c0_i32_1 = arith.constant 0 : i32
    return %c0_i32, %arg0, %c0_i32_0 : i32, i32, i32
  }
  func.func @transform_1(%arg0: i32) -> (i32, i32) {
    %c0_i32 = arith.constant 0 : i32
    %c0_i32_0 = arith.constant 0 : i32
    %c0_i32_1 = arith.constant 0 : i32
    return %c0_i32, %c0_i32_0 : i32, i32
  }
  func.func @transform_2(%arg0: i32) -> (i32, i32, i32) {
    %c0_i32 = arith.constant 0 : i32
    %c0_i32_0 = arith.constant 0 : i32
    %c0_i32_1 = arith.constant 0 : i32
    %c0_i32_2 = arith.constant 0 : i32
    return %c0_i32, %c0_i32_0, %c0_i32_1 : i32, i32, i32
  }
  func.func @transform_3(%arg0: i32) -> (i32, i32) {
    %c0_i32 = arith.constant 0 : i32
    %c0_i32_0 = arith.constant 0 : i32
    %c0_i32_1 = arith.constant 0 : i32
    return %c0_i32, %c0_i32_0 : i32, i32
  }
  func.func @transform_4(%arg0: i32) -> (i32, i32, i32) {
    %c0_i32 = arith.constant 0 : i32
    %c0_i32_0 = arith.constant 0 : i32
    %c0_i32_1 = arith.constant 0 : i32
    return %c0_i32, %arg0, %c0_i32_0 : i32, i32, i32
  }
}

</mosaic_0001>

<bundles_post_ra>
// kernel: tpu_custom_call.1
= control target key start
LH: loop header
LB: loop body
LE: loop exit
PB: predicated region body
PF: predicated region fallthrough
CT: control target
= control target key end

     0   :  { %vm41_vm0 = vcmask 1047556   ;;  %v1021_v14 = vmov 1983009808   ;;  %s1456_s0 = inlined_call_operand.vmem [shape: f32[16,2,8], index: 0, kind: input, shape index: {}]   ;;  %s1457_s1 = inlined_call_operand.vmem [shape: f32[16,16], index: 1, kind: input, shape index: {}]   ;;  %s1458_s2 = inlined_call_operand.vmem [shape: f32[3,8,32], index: 2, kind: input, shape index: {}]   ;;  %s1459_s3 = inlined_call_operand.vmem [shape: f32[1,32], index: 3, kind: input, shape index: {}]   ;;  %s1460_s4 = inlined_call_operand.hbm [shape: f32[16,2,32], index: 4, kind: output, shape index: {}]  }
   0x1   :  { %v1057_v0 = vld [vmem:[%s1456_s0] sm:$0x3]  ;;  %v1062_v1 = vld [vmem:[%s1456_s0 + $0x4] sm:$0x3]  ;;  %v1067_v2 = vld [vmem:[%s1456_s0 + $0x6] sm:$0x3]  ;;  %v44_v15 = vunpack.c.l.s4 %v1021_v14 }
   0x2   :  { %v1072_v3 = vld [vmem:[%s1456_s0 + $0x2] sm:$0x3]  ;;  %v1077_v4 = vld [vmem:[%s1456_s0 + $0x8] sm:$0x3]  ;;  %v1082_v5 = vld [vmem:[%s1456_s0 + $0xa] sm:$0x3] }
   0x3   :  { %v1087_v6 = vld [vmem:[%s1456_s0 + $0xc] sm:$0x3]  ;;  %v1092_v7 = vld [vmem:[%s1456_s0 + $0xe] sm:$0x3]  ;;  %v1097_v8 = vld [vmem:[%s1456_s0 + $0x10] sm:$0x3]  ;;  %v1134_v23 = vunpack.c.0.s8 %v44_v15 }
   0x4   :  { %v1102_v9 = vld [vmem:[%s1456_s0 + $0x12] sm:$0x3]  ;;  %v1107_v10 = vld [vmem:[%s1456_s0 + $0x14] sm:$0x3]  ;;  %v1112_v11 = vld [vmem:[%s1456_s0 + $0x16] sm:$0x3] }
   0x5   :  { %v1117_v12 = vld [vmem:[%s1456_s0 + $0x1c] sm:$0x3]  ;;  %v40_v13 = vrot.slane %v1062_v1, 4  ;;  %v47_v16 = vrot.slane %v1067_v2, 4  ;;  %v53_v17 = vrot.slane %v1087_v6, 4  ;;  %v59_v18 = vrot.slane %v1092_v7, 4 }
   0x6   :  { %310 = vst [vmem:[#allocation1] ss:$4 sm:$0xff] %v1057_v0  ;;  %v1127_v19 = vld [vmem:[%s1456_s0 + $0x18] sm:$0x3]  ;;  %v81_v21 = vrot.slane %v1107_v10, 4  ;;  %v87_v22 = vrot.slane %v1112_v11, 4 }
   0x7   :  { %v42_v20 = vsel %vm41_vm0, %v40_v13, %v1057_v0  ;;  %312 = vst [vmem:[#allocation1 + $0x1] ss:$4 sm:$0xff] %v1072_v3  ;;  %v48_v24 = vsel %vm41_vm0, %v47_v16, %v1072_v3  ;;  %v54_v25 = vsel %vm41_vm0, %v53_v17, %v1077_v4  ;;  %v60_v26 = vsel %vm41_vm0, %v59_v18, %v1082_v5 }
   0x8   :  { %314 = vst [vmem:[#allocation1 + $0x2] ss:$4 sm:$0xff] %v1062_v1 }
   0x9   :  { %9 = vsyncpa [#allocation3], 0  ;;  %v1146_v27 = vld [vmem:[%s1456_s0 + $0x1e] sm:$0x3]  ;;  %v1022_v28 = vmov 1934713408   ;;  %v82_v30 = vsel %vm41_vm0, %v81_v21, %v1097_v8  ;;  %v88_v31 = vsel %vm41_vm0, %v87_v22, %v1102_v9  ;;  %v46_v33 = vperm.slane %v42_v20, %v1134_v23 }
   0xa   :  { %v68_v29 = vunpack.c.l.s4 %v1022_v28  ;;  %v93_v32 = vrot.slane %v1117_v12, 4  ;;  %316 = vst [vmem:[#allocation1 + $0x3] ss:$4 sm:$0xff] %v1067_v2  ;;  %v52_v34 = vperm.slane %v48_v24, %v1134_v23  ;;  %v58_v35 = vperm.slane %v54_v25, %v1134_v23  ;;  %v1162_v37 = vld [vmem:[%s1456_s0 + $0x1a] sm:$0x3]  ;;  %s1023_s0 = smov 8  }
   0xb   :  { %v64_v36 = vperm.slane %v60_v26, %v1134_v23  ;;  %318 = vst [vmem:[#allocation1 + $0x20] ss:$4 sm:$0xff] %v1077_v4  ;;  %v86_v39 = vperm.slane %v82_v30, %v1134_v23  ;;  %v92_v40 = vperm.slane %v88_v31, %v1134_v23  ;;  %v99_v44 = vrot.slane %v1146_v27, 4  ;;  %s1025_s25 = smov 120   ;;  %s946_s9 = sshll.u32 %s1460_s4, 4  ;;  %s947_s9 = int_to_ptr.hbm [resolvable:$true] %s946_s9 }
   0xc   :  { %v1164_v38 = vunpack.c.0.s8 %v68_v29  ;;  %320 = vst [vmem:[#allocation1 + $0x21] ss:$4 sm:$0xff] %v1082_v5  ;;  %v65_v41 = vrot.slane %v52_v34, 4  ;;  %v94_v43 = vsel %vm41_vm0, %v93_v32, %v1127_v19  ;;  %v1024_v14 = vmov 0.0   ;;  %s1027_s10 = smov 32   ;;  %s1028_s11 = smov 2  }
   0xd   :  { %v71_v42 = vrot.slane %v64_v36, 4  ;;  %322 = vst [vmem:[#allocation1 + $0x22] ss:$4 sm:$0xff] %v1087_v6  ;;  %v105_v45 = vrot.slane %v92_v40, 4  ;;  %v100_v48 = vsel %vm41_vm0, %v99_v44, %v1162_v37  ;;  %v98_v50 = vperm.slane %v94_v43, %v1134_v23 }
   0xe   :  { %324 = vst [vmem:[#allocation1 + $0x23] ss:$4 sm:$0xff] %v1092_v7  ;;  %v66_v46 = vsel %vm41_vm0, %v65_v41, %v46_v33  ;;  %v104_v51 = vperm.slane %v100_v48, %v1134_v23  ;;  %v136_v15 = vperm.slane %v1024_v14, %v1134_v23  ;;  %vm129_vm1 = vcmask 64512   ;;  %v1213_v33 = vld [vmem:[%s1457_s1] sm:$0xff] }
   0xf   :  { %v72_v47 = vsel %vm41_vm0, %v71_v42, %v58_v35  ;;  %v70_v49 = vperm.slane %v66_v46, %v1164_v38  ;;  %v106_v52 = vsel %vm41_vm0, %v105_v45, %v86_v39  ;;  %vm151_vm2 = vcmask 130048   ;;  %v1221_v35 = vld [vmem:[%s1457_s1 + $0x8] sm:$0xff] }
  0x10   :  { %v76_v53 = vperm.slane %v72_v47, %v1164_v38  ;;  %v110_v54 = vperm.slane %v106_v52, %v1164_v38  ;;  %v111_v57 = vrot.slane %v104_v51, 4  ;;  %v137_v16 = vrot.slane %v136_v15, 4  ;;  %v964_v47 = vld [vmem:[%s1458_s2 + $0x8] sm:$0xff] }
  0x11   :  { %v1184_v55 = vld.sshfl [vmem:[#allocation1] sm:$0xff pattern:$0x73625140]  ;;  %v79_v56 = vrot.slane %v70_v49, 4  ;;  %486 = vmatpush.msra.mxu2 %v964_v47  ;;  %vm923_vm3 = vcmask 254976  }
  0x12   :  { %328 = vst [vmem:[#allocation1 + $0x1] ss:$4 sm:$0xff] %v1102_v9  ;;  %v119_v58 = vrot.slane %v110_v54, 4  ;;  %v112_v59 = vsel %vm41_vm0, %v111_v57, %v98_v50  ;;  %v138_v17 = vsel %vm41_vm0, %v137_v16, %v136_v15  ;;  %v77_v25 = vrot.slane %v76_v53, 4 }
  0x13   :  { %327 = vst [vmem:[#allocation1] ss:$4 sm:$0xff] %v1097_v8  ;;  %v80_v60 = vsel %vm41_vm0, %v76_v53, %v79_v56  ;;  %v116_v61 = vperm.slane %v112_v59, %v1164_v38  ;;  %v142_v18 = vperm.slane %v138_v17, %v1164_v38 }
  0x14   :  { %329 = vst [vmem:[#allocation1 + $0x2] ss:$4 sm:$0xff] %v1107_v10  ;;  %v78_v31 = vsel %vm41_vm0, %v77_v25, %v70_v49  ;;  %v293_v49 = vld [vmem:[%s1458_s2] sm:$0xff] }
  0x15   :  { %v1192_v62 = vld.sshfl [vmem:[#allocation1 + $0x20] sm:$0xff pattern:$0x73625140]  ;;  %330 = vst [vmem:[#allocation1 + $0x3] ss:$4 sm:$0xff] %v1112_v11  ;;  %v120_v63 = vsel %vm41_vm0, %v116_v61, %v119_v58  ;;  %v143_v20 = vrot.slane %v142_v18, 4  ;;  %360 = vmatpush.msra.mxu1 %v293_v49 }
  0x16   :  { %331 = vst [vmem:[#allocation1 + $0x20] ss:$4 sm:$0xff] %v1127_v19  ;;  %v984_v13 = vpack.i.bf16 %v80_v60, %v120_v63  ;;  %v117_v24 = vrot.slane %v116_v61, 4  ;;  %960 = vmatmul.msk.f32.vlgmr.msra.gmra.mxu1 %vm129_vm1, %v1184_v55 }
  0x17   :  { %332 = vst [vmem:[#allocation1 + $0x21] ss:$4 sm:$0xff] %v1162_v37  ;;  %v145_v21 = vsel %vm41_vm0, %v142_v18, %v143_v20  ;;  %v144_v22 = vsel %vm41_vm0, %v143_v20, %v142_v18 }
  0x18   :  { %333 = vst [vmem:[#allocation1 + $0x22] ss:$4 sm:$0xff] %v1117_v12  ;;  %985 = vrot.lane.b32.xlu0 %v984_v13, %s1023_s0  ;;  %v118_v28 = vsel %vm41_vm0, %v117_v24, %v110_v54 }
  0x19   :  { %334 = vst [vmem:[#allocation1 + $0x23] ss:$4 sm:$0xff] %v1146_v27 }
  0x1e   :  { %961 = vmatmul.msk.f32.gmra.mxu1 %vm129_vm1, %v1192_v62  ;;  %v335_v62 = vld.sshfl [vmem:[#allocation1] sm:$0xff pattern:$0x73625140] }
  0x20   :  { %147 = vrot.lane.b32.xlu0 %v145_v21, %s1023_s0 }
  0x26   :  { %962 = vmatmul.msk.f32.gmra.mxu1 %vm129_vm1, %v335_v62 }
  0x8a   :  { %v986_v26 = vpop.permute.xlu0 %985 }
  0x8b   :  { %v988_v29 = vunpack.i.h.bf16 %v986_v26  ;;  %v987_v30 = vunpack.i.l.bf16 %v986_v26 }
  0x8d   :  { %v131_v32 = vsel %vm129_vm1, %v118_v28, %v987_v30  ;;  %v130_v34 = vsel %vm129_vm1, %v78_v31, %v988_v29 }
  0x8e   :  { %172 = vmatpush.msra.mxu3 %v131_v32 }
  0x90   :  { %173 = vmatpush.msra.mxu3 %v130_v34 }
  0x91   :  { %958 = vmatmul.msk.f32.vlgmr.msra.gmra.mxu3 %vm151_vm2, %v1213_v33 }
  0x92   :  { %v148_v39 = vpop.permute.xlu0 %147 }
  0x93   :  { %v1226_v40 = vsel %vm129_vm1, %v144_v22, %v148_v39 }
  0x99   :  { %959 = vmatmul.msk.f32.gmra.mxu3 %vm151_vm2, %v1221_v35 }
 0x114   :  { %v175_v36 = vpop.f32.mrf.mxu3 }
 0x115   :  { %v176_v43 = vadd.f32 %v175_v36, %v1226_v40 }
 0x117   :  { %v189_v48 = vrot.slane %v176_v43, 4  ;;  %v194_v13 = vperm.slane %v176_v43, %v1134_v23 }
 0x119   :  { %v190_v56 = vsel %vm41_vm0, 0.0, %v189_v48  ;;  %v211_v31 = vrot.slane %v194_v13, 4 }
 0x11a   :  { %v198_v14 = vperm.slane %v190_v56, %v1134_v23 }
 0x11c   :  { %v178_v41 = vpop.f32.mrf.mxu3  ;;  %v223_v32 = vrot.slane %v198_v14, 4 }
 0x11d   :  { %v179_v42 = vadd.f32 %v178_v41, %v1226_v40 }
 0x11f   :  { %185 = vrot.lane.b32.xlu1 %v179_v42, %s1025_s25  ;;  %v241_v44 = vrot.slane %v179_v42, 4  ;;  %v246_v46 = vperm.slane %v179_v42, %v1134_v23 }
 0x121   :  { %v242_v45 = vsel %vm41_vm0, 0.0, %v241_v44  ;;  %v263_v52 = vrot.slane %v246_v46, 4 }
 0x122   :  { %v250_v50 = vperm.slane %v242_v45, %v1134_v23 }
 0x124   :  { %v275_v60 = vrot.slane %v250_v50, 4 }
 0x127   :  { %183 = vrot.lane.b32.xlu1 %v176_v43, %s1025_s25 }
 0x191   :  { %v186_v51 = vpop.permute.xlu1 %185 }
 0x192   :  { %v251_v53 = vrot.slane %v186_v51, 4  ;;  %v256_v54 = vperm.slane %v186_v51, %v1134_v23 }
 0x194   :  { %v252_v57 = vsel %vm41_vm0, 0.0, %v251_v53  ;;  %v261_v58 = vrot.slane %v256_v54, 4  ;;  %v264_v59 = vsel %vm41_vm0, %v256_v54, %v263_v52 }
 0x195   :  { %v260_v61 = vperm.slane %v252_v57, %v1134_v23  ;;  %v1249_v63 = vperm.slane %v264_v59, %v1164_v38 }
 0x196   :  { %v262_v15 = vsel %vm41_vm0, %v261_v58, %v246_v46 }
 0x197   :  { %v1255_v55 = vperm.slane %v262_v15, %v1164_v38  ;;  %v273_v16 = vrot.slane %v260_v61, 4  ;;  %v276_v17 = vsel %vm41_vm0, %v260_v61, %v275_v60  ;;  %v287_v18 = vrot.slane %v1249_v63, 4  ;;  %v336_v61 = vld.sshfl [vmem:[#allocation1 + $0x20] sm:$0xff pattern:$0x73625140] }
 0x198   :  { %v1260_v20 = vperm.slane %v276_v17, %v1164_v38  ;;  %963 = vmatmul.msk.f32.gmra.mxu1 %vm129_vm1, %v336_v61 }
 0x199   :  { %v274_v21 = vsel %vm41_vm0, %v273_v16, %v250_v50  ;;  %v285_v22 = vrot.slane %v1255_v55, 4  ;;  %v1265_v24 = vsel %vm41_vm0, 0.0, %v287_v18  ;;  %v184_v25 = vpop.permute.xlu1 %183  ;;  %v582_v48 = vsel %vm41_vm0, %v287_v18, %v1255_v55 }
 0x19a   :  { %v1268_v26 = vperm.slane %v274_v21, %v1164_v38  ;;  %v291_v28 = vrot.slane %v1260_v20, 4  ;;  %v587_v29 = vrot.slane %v1265_v24, 4  ;;  %v199_v30 = vrot.slane %v184_v25, 4 }
 0x19b   :  { %v1275_v34 = vsel %vm41_vm0, 0.0, %v285_v22  ;;  %v204_v36 = vperm.slane %v184_v25, %v1134_v23 }
 0x19c   :  { %v289_v39 = vrot.slane %v1268_v26, 4  ;;  %v1280_v41 = vsel %vm41_vm0, 0.0, %v291_v28  ;;  %v200_v42 = vsel %vm41_vm0, 0.0, %v199_v30  ;;  %v588_v43 = vsel %vm41_vm0, %v587_v29, %v1275_v34 }
 0x19d   :  { %v598_v44 = vrot.slane %v1280_v41, 4  ;;  %v208_v45 = vperm.slane %v200_v42, %v1134_v23  ;;  %v209_v46 = vrot.slane %v204_v36, 4  ;;  %v212_v47 = vsel %vm41_vm0, %v204_v36, %v211_v31 }
 0x19e   :  { %v220_v49 = vperm.slane %v212_v47, %v1164_v38  ;;  %v1292_v50 = vsel %vm41_vm0, 0.0, %v289_v39  ;;  %v592_v51 = vperm.slane %v588_v43, %v1134_v23  ;;  %v593_v56 = vsel %vm41_vm0, %v291_v28, %v1268_v26 }
 0x19f   :  { %v210_v52 = vsel %vm41_vm0, %v209_v46, %v194_v13  ;;  %v221_v53 = vrot.slane %v208_v45, 4  ;;  %v224_v54 = vsel %vm41_vm0, %v208_v45, %v223_v32  ;;  %v599_v60 = vsel %vm41_vm0, %v598_v44, %v1292_v50 }
 0x1a0   :  { %v216_v57 = vperm.slane %v210_v52, %v1164_v38  ;;  %v232_v58 = vperm.slane %v224_v54, %v1164_v38  ;;  %v235_v59 = vrot.slane %v220_v49, 4  ;;  %440 = vst [vmem:[#allocation1 + $0x2] ss:$4 sm:$0xff] %v220_v49  ;;  %v586_v13 = vperm.slane %v582_v48, %v1134_v23 }
 0x1a1   :  { %v222_v15 = vsel %vm41_vm0, %v221_v53, %v198_v14  ;;  %v603_v16 = vperm.slane %v599_v60, %v1134_v23  ;;  %v604_v17 = vrot.slane %v592_v51, 4  ;;  %v597_v29 = vperm.slane %v593_v56, %v1134_v23 }
 0x1a2   :  { %v228_v18 = vperm.slane %v222_v15, %v1164_v38  ;;  %v233_v21 = vrot.slane %v216_v57, 4  ;;  %v236_v22 = vsel %vm41_vm0, 0.0, %v235_v59  ;;  %v239_v25 = vrot.slane %v232_v58, 4  ;;  %436 = vst [vmem:[#allocation1] ss:$4 sm:$0xff] %v216_v57 }
 0x1a3   :  { %442 = vst [vmem:[#allocation1 + $0x3] ss:$4 sm:$0xff] %v236_v22  ;;  %v549_v28 = vrot.slane %v236_v22, 4  ;;  %v610_v30 = vrot.slane %v603_v16, 4  ;;  %v605_v36 = vsel %vm41_vm0, %v604_v17, %v586_v13  ;;  %v544_v39 = vsel %vm41_vm0, %v235_v59, %v216_v57 }
 0x1a4   :  { %v234_v14 = vsel %vm41_vm0, 0.0, %v233_v21  ;;  %v237_v31 = vrot.slane %v228_v18, 4  ;;  %v240_v32 = vsel %vm41_vm0, 0.0, %v239_v25  ;;  %444 = vst [vmem:[#allocation1 + $0x20] ss:$4 sm:$0xff] %v228_v18  ;;  %v555_v46 = vsel %vm41_vm0, %v239_v25, %v228_v18 }
 0x1a5   :  { %438 = vst [vmem:[#allocation1 + $0x1] ss:$4 sm:$0xff] %v234_v14  ;;  %v550_v42 = vsel %vm41_vm0, %v549_v28, %v234_v14  ;;  %v560_v43 = vrot.slane %v240_v32, 4  ;;  %v611_v45 = vsel %vm41_vm0, %v610_v30, %v597_v29  ;;  %v609_v48 = vperm.slane %v605_v36, %v1164_v38 }
 0x1a6   :  { %448 = vst [vmem:[#allocation1 + $0x22] ss:$4 sm:$0xff] %v232_v58  ;;  %v238_v44 = vsel %vm41_vm0, 0.0, %v237_v31  ;;  %v554_v62 = vperm.slane %v550_v42, %v1134_v23  ;;  %v615_v49 = vperm.slane %v611_v45, %v1164_v38  ;;  %v548_v51 = vperm.slane %v544_v39, %v1134_v23 }
 0x1a7   :  { %450 = vst [vmem:[#allocation1 + $0x23] ss:$4 sm:$0xff] %v240_v32  ;;  %v561_v47 = vsel %vm41_vm0, %v560_v43, %v238_v44  ;;  %v559_v56 = vperm.slane %v555_v46, %v1134_v23  ;;  %v618_v60 = vrot.slane %v609_v48, 4  ;;  %v971_v32 = vld [vmem:[%s1458_s2 + $0x10] sm:$0xff] }
 0x1a8   :  { %v565_v52 = vperm.slane %v561_v47, %v1134_v23  ;;  %v566_v53 = vrot.slane %v554_v62, 4  ;;  %446 = vst [vmem:[#allocation1 + $0x21] ss:$4 sm:$0xff] %v238_v44  ;;  %v616_v54 = vrot.slane %v615_v49, 4  ;;  %865 = vmatpush.msra.mxu0 %v971_v32 }
 0x1a9   :  { %v619_v21 = vsel %vm41_vm0, %v615_v49, %v618_v60 }
 0x1aa   :  { %v567_v57 = vsel %vm41_vm0, %v566_v53, %v548_v51  ;;  %v572_v58 = vrot.slane %v565_v52, 4  ;;  %v617_v15 = vsel %vm41_vm0, %v616_v54, %v609_v48 }
 0x1ab   :  { %v571_v59 = vperm.slane %v567_v57, %v1164_v38 }
 0x1ac   :  { %v451_v13 = vld.sshfl [vmem:[#allocation1] sm:$0xff pattern:$0x73625140]  ;;  %v573_v16 = vsel %vm41_vm0, %v572_v58, %v559_v56 }
 0x1ad   :  { %453 = vst [vmem:[#allocation1] ss:$4 sm:$0xff] %v1255_v55  ;;  %965 = vmatmul.msk.f32.vlgmr.msra.gmra.mxu2 %vm129_vm1, %v451_v13  ;;  %v577_v17 = vperm.slane %v573_v16, %v1164_v38  ;;  %v580_v18 = vrot.slane %v571_v59, 4 }
 0x1ae   :  { %454 = vst [vmem:[#allocation1 + $0x1] ss:$4 sm:$0xff] %v1275_v34 }
 0x1af   :  { %455 = vst [vmem:[#allocation1 + $0x2] ss:$4 sm:$0xff] %v1249_v63  ;;  %v581_v61 = vsel %vm41_vm0, %v577_v17, %v580_v18  ;;  %v452_v22 = vld.sshfl [vmem:[#allocation1 + $0x20] sm:$0xff pattern:$0x73625140]  ;;  %v578_v25 = vrot.slane %v577_v17, 4 }
 0x1b0   :  { %456 = vst [vmem:[#allocation1 + $0x3] ss:$4 sm:$0xff] %v1265_v24  ;;  %v989_v28 = vpack.i.bf16 %v581_v61, %v619_v21 }
 0x1b1   :  { %458 = vst [vmem:[#allocation1 + $0x21] ss:$4 sm:$0xff] %v1292_v50  ;;  %v579_v55 = vsel %vm41_vm0, %v578_v25, %v571_v59 }
 0x1b2   :  { %990 = vrot.lane.b32.xlu2 %v989_v28, %s1023_s0  ;;  %457 = vst [vmem:[#allocation1 + $0x20] ss:$4 sm:$0xff] %v1268_v26 }
 0x1b3   :  { %459 = vst [vmem:[#allocation1 + $0x22] ss:$4 sm:$0xff] %v1260_v20 }
 0x1b4   :  { %460 = vst [vmem:[#allocation1 + $0x23] ss:$4 sm:$0xff] %v1280_v41 }
 0x1b5   :  { %966 = vmatmul.msk.f32.gmra.mxu2 %vm129_vm1, %v452_v22 }
 0x1b7   :  { %v461_v63 = vld.sshfl [vmem:[#allocation1] sm:$0xff pattern:$0x73625140] }
 0x1bb   :  { %v462_v34 = vld.sshfl [vmem:[#allocation1 + $0x20] sm:$0xff pattern:$0x73625140] }
 0x1bd   :  { %967 = vmatmul.msk.f32.gmra.mxu2 %vm129_vm1, %v461_v63 }
 0x1c5   :  { %968 = vmatmul.msk.f32.gmra.mxu2 %vm129_vm1, %v462_v34 }
 0x20c   :  { %v991_v24 = vpop.permute.xlu2 %990 }
 0x20d   :  { %v993_v50 = vunpack.i.h.bf16 %v991_v24  ;;  %v992_v29 = vunpack.i.l.bf16 %v991_v24 }
 0x20f   :  { %v629_v30 = vsel %vm129_vm1, %v617_v15, %v992_v29  ;;  %v628_v26 = vsel %vm129_vm1, %v579_v55, %v993_v50 }
 0x210   :  { %644 = vmatpush.msrb.mxu3 %v629_v30 }
 0x212   :  { %645 = vmatpush.msrb.mxu3 %v628_v26 }
 0x213   :  { %969 = vmatmul.msk.f32.vlgmr.msrb.gmra.mxu3 %vm151_vm2, %v1213_v33 }
 0x21b   :  { %970 = vmatmul.msk.f32.gmra.mxu3 %vm151_vm2, %v1221_v35 }
 0x296   :  { %v647_v20 = vpop.f32.mrf.mxu3 }
 0x297   :  { %v648_v41 = vadd.f32 %v647_v20, %v1226_v40 }
 0x299   :  { %655 = vrot.lane.b32.xlu2 %v648_v41, %s1025_s25  ;;  %v661_v36 = vrot.slane %v648_v41, 4  ;;  %v666_v35 = vperm.slane %v648_v41, %v1134_v23 }
 0x29b   :  { %v662_v33 = vsel %vm41_vm0, 0.0, %v661_v36  ;;  %v683_v43 = vrot.slane %v666_v35, 4 }
 0x29c   :  { %v670_v39 = vperm.slane %v662_v33, %v1134_v23 }
 0x29e   :  { %v650_v14 = vpop.f32.mrf.mxu3  ;;  %v695_v47 = vrot.slane %v670_v39, 4 }
 0x29f   :  { %v651_v31 = vadd.f32 %v650_v14, %v1226_v40 }
 0x2a1   :  { %657 = vrot.lane.b32.xlu0 %v651_v31, %s1025_s25 }
 0x2f3   :  { %v656_v42 = vpop.permute.xlu2 %655 }
 0x2f4   :  { %v671_v44 = vrot.slane %v656_v42, 4  ;;  %v676_v62 = vperm.slane %v656_v42, %v1134_v23 }
 0x2f6   :  { %v672_v40 = vsel %vm41_vm0, 0.0, %v671_v44  ;;  %v681_v45 = vrot.slane %v676_v62, 4  ;;  %v684_v46 = vsel %vm41_vm0, %v676_v62, %v683_v43 }
 0x2f7   :  { %v680_v48 = vperm.slane %v672_v40, %v1134_v23  ;;  %v692_v49 = vperm.slane %v684_v46, %v1164_v38 }
 0x2f8   :  { %v682_v51 = vsel %vm41_vm0, %v681_v45, %v666_v35 }
 0x2f9   :  { %v688_v52 = vperm.slane %v682_v51, %v1164_v38  ;;  %v693_v53 = vrot.slane %v680_v48, 4  ;;  %v696_v54 = vsel %vm41_vm0, %v680_v48, %v695_v47  ;;  %v707_v56 = vrot.slane %v692_v49, 4 }
 0x2fa   :  { %v704_v57 = vperm.slane %v696_v54, %v1164_v38  ;;  %v767_v58 = vmul.f32 2.0, %v692_v49 }
 0x2fb   :  { %v694_v59 = vsel %vm41_vm0, %v693_v53, %v670_v39  ;;  %v705_v60 = vrot.slane %v688_v52, 4  ;;  %v708_v15 = vsel %vm41_vm0, 0.0, %v707_v56  ;;  %v765_v13 = vmul.f32 2.0, %v688_v52 }
 0x2fc   :  { %v700_v16 = vperm.slane %v694_v59, %v1164_v38  ;;  %v711_v17 = vrot.slane %v704_v57, 4  ;;  %v768_v18 = vmul.f32 2.0, %v708_v15  ;;  %v771_v61 = vmul.f32 2.0, %v704_v57 }
 0x2fd   :  { %v706_v21 = vsel %vm41_vm0, 0.0, %v705_v60  ;;  %v781_v22 = vsub.f32 %v765_v13, %v1057_v0  ;;  %v783_v25 = vsub.f32 %v767_v58, %v1062_v1 }
 0x2fe   :  { %v709_v28 = vrot.slane %v700_v16, 4  ;;  %v712_v55 = vsel %vm41_vm0, 0.0, %v711_v17  ;;  %v766_v63 = vmul.f32 2.0, %v706_v21  ;;  %v769_v34 = vmul.f32 2.0, %v700_v16 }
 0x2ff   :  { %v772_v24 = vmul.f32 2.0, %v712_v55  ;;  %v784_v50 = vsub.f32 %v768_v18, %v1067_v2  ;;  %815 = vst [vmem:[#allocation1] ss:$4 sm:$0xff] %v781_v22  ;;  %v787_v20 = vsub.f32 %v771_v61, %v1087_v6  ;;  %v718_v6 = vperm.slane %v651_v31, %v1134_v23 }
 0x300   :  { %v710_v29 = vsel %vm41_vm0, 0.0, %v709_v28  ;;  %v782_v30 = vsub.f32 %v766_v63, %v1072_v3  ;;  %v785_v26 = vsub.f32 %v769_v34, %v1077_v4  ;;  %819 = vst [vmem:[#allocation1 + $0x2] ss:$4 sm:$0xff] %v783_v25  ;;  %v713_v3 = vrot.slane %v651_v31, 4  ;;  %v488_v34 = vpop.f32.mrf.mxu2 }
 0x301   :  { %v770_v0 = vmul.f32 2.0, %v710_v29  ;;  %821 = vst [vmem:[#allocation1 + $0x3] ss:$4 sm:$0xff] %v784_v50  ;;  %v788_v1 = vsub.f32 %v772_v24, %v1092_v7  ;;  %v735_v36 = vrot.slane %v718_v6, 4 }
 0x302   :  { %817 = vst [vmem:[#allocation1 + $0x1] ss:$4 sm:$0xff] %v782_v30  ;;  %v714_v4 = vsel %vm41_vm0, 0.0, %v713_v3 }
 0x303   :  { %v786_v41 = vsub.f32 %v770_v0, %v1082_v5  ;;  %823 = vst [vmem:[#allocation1 + $0x20] ss:$4 sm:$0xff] %v785_v26  ;;  %v722_v7 = vperm.slane %v714_v4, %v1134_v23  ;;  %v505_v0 = vrot.slane %v488_v34, 4 }
 0x304   :  { %827 = vst [vmem:[#allocation1 + $0x22] ss:$4 sm:$0xff] %v787_v20  ;;  %v504_v20 = vrot.slane %v488_v34, 2 }
 0x305   :  { %825 = vst [vmem:[#allocation1 + $0x21] ss:$4 sm:$0xff] %v786_v41  ;;  %v747_v43 = vrot.slane %v722_v7, 4 }
 0x306   :  { %829 = vst [vmem:[#allocation1 + $0x23] ss:$4 sm:$0xff] %v788_v1  ;;  %v506_v1 = vrot.slane %v488_v34, 6 }
 0x309   :  { %v830_v2 = vld.sshfl [vmem:[#allocation1] sm:$0xff pattern:$0x73625140] }
 0x30a   :  { %972 = vmatmul.msk.f32.vlgmr.msra.gmra.mxu0 %vm129_vm1, %v830_v2 }
 0x30d   :  { %v831_v14 = vld.sshfl [vmem:[#allocation1 + $0x20] sm:$0xff pattern:$0x73625140] }
 0x312   :  { %973 = vmatmul.msk.f32.gmra.mxu0 %vm129_vm1, %v831_v14 }
 0x313   :  { %v658_v32 = vpop.permute.xlu0 %657 }
 0x314   :  { %v723_v5 = vrot.slane %v658_v32, 4  ;;  %v728_v33 = vperm.slane %v658_v32, %v1134_v23 }
 0x316   :  { %v724_v35 = vsel %vm41_vm0, 0.0, %v723_v5  ;;  %v733_v39 = vrot.slane %v728_v33, 4  ;;  %v736_v42 = vsel %vm41_vm0, %v728_v33, %v735_v36  ;;  %v491_v36 = vpop.f32.mrf.mxu2 }
 0x317   :  { %v732_v44 = vperm.slane %v724_v35, %v1134_v23  ;;  %v744_v31 = vperm.slane %v736_v42, %v1164_v38 }
 0x318   :  { %v734_v62 = vsel %vm41_vm0, %v733_v39, %v718_v6 }
 0x319   :  { %v740_v40 = vperm.slane %v734_v62, %v1164_v38  ;;  %v745_v45 = vrot.slane %v732_v44, 4  ;;  %v748_v46 = vsel %vm41_vm0, %v732_v44, %v747_v43  ;;  %v759_v47 = vrot.slane %v744_v31, 4 }
 0x31a   :  { %v756_v48 = vperm.slane %v748_v46, %v1164_v38  ;;  %v775_v49 = vmul.f32 2.0, %v744_v31  ;;  %v507_v46 = vrot.slane %v491_v36, 2 }
 0x31b   :  { %v746_v51 = vsel %vm41_vm0, %v745_v45, %v722_v7  ;;  %v757_v52 = vrot.slane %v740_v40, 4  ;;  %v760_v53 = vsel %vm41_vm0, 0.0, %v759_v47  ;;  %v773_v54 = vmul.f32 2.0, %v740_v40 }
 0x31c   :  { %v752_v23 = vperm.slane %v746_v51, %v1164_v38  ;;  %v763_v56 = vrot.slane %v756_v48, 4  ;;  %v776_v57 = vmul.f32 2.0, %v760_v53  ;;  %v779_v58 = vmul.f32 2.0, %v756_v48 }
 0x31d   :  { %v758_v59 = vsel %vm41_vm0, 0.0, %v757_v52  ;;  %v789_v60 = vsub.f32 %v773_v54, %v1097_v8  ;;  %v791_v15 = vsub.f32 %v775_v49, %v1107_v10  ;;  %v508_v47 = vrot.slane %v491_v36, 4 }
 0x31e   :  { %v761_v13 = vrot.slane %v752_v23, 4  ;;  %v764_v16 = vsel %vm41_vm0, 0.0, %v763_v56  ;;  %v774_v17 = vmul.f32 2.0, %v758_v59  ;;  %v777_v18 = vmul.f32 2.0, %v752_v23 }
 0x31f   :  { %v780_v61 = vmul.f32 2.0, %v764_v16  ;;  %v792_v21 = vsub.f32 %v776_v57, %v1112_v11  ;;  %832 = vst [vmem:[#allocation1] ss:$4 sm:$0xff] %v789_v60  ;;  %v795_v28 = vsub.f32 %v779_v58, %v1117_v12  ;;  %v1419_v12 = vld [vmem:[%s1459_s3] ss:$0 sm:$0xff]  ;;  %v509_v48 = vrot.slane %v491_v36, 6 }
 0x320   :  { %v762_v38 = vsel %vm41_vm0, 0.0, %v761_v13  ;;  %v790_v22 = vsub.f32 %v774_v17, %v1102_v9  ;;  %v793_v25 = vsub.f32 %v777_v18, %v1127_v19  ;;  %834 = vst [vmem:[#allocation1 + $0x2] ss:$4 sm:$0xff] %v791_v15  ;;  %v362_v19 = vpop.f32.mrf.mxu1  ;;  %v494_v18 = vpop.f32.mrf.mxu2  ;;  %s1026_s3 = smov [#allocation2]  }
 0x321   :  { %v778_v8 = vmul.f32 2.0, %v762_v38  ;;  %835 = vst [vmem:[#allocation1 + $0x3] ss:$4 sm:$0xff] %v792_v21  ;;  %v796_v10 = vsub.f32 %v780_v61, %v1146_v27  ;;  %v378_v27 = vrot.slane %v362_v19, 2  ;;  %v379_v63 = vrot.slane %v362_v19, 4  ;;  %s944_s6 = sshll.u32 %s1026_s3, 4  ;;  %s945_s6 = int_to_ptr.vmem [resolvable:$true] %s944_s6 }
 0x322   :  { %833 = vst [vmem:[#allocation1 + $0x1] ss:$4 sm:$0xff] %v790_v22  ;;  %v402_v24 = vadd.f32 %v1419_v12, %v362_v19 }
 0x323   :  { %v794_v55 = vsub.f32 %v778_v8, %v1162_v37  ;;  %836 = vst [vmem:[#allocation1 + $0x20] ss:$4 sm:$0xff] %v793_v25  ;;  %v380_v37 = vrot.slane %v362_v19, 6  ;;  %v403_v50 = vadd.f32 %v1419_v12, %v378_v27  ;;  %v404_v29 = vadd.f32 %v1419_v12, %v379_v63 }
 0x324   :  { %838 = vst [vmem:[#allocation1 + $0x22] ss:$4 sm:$0xff] %v795_v28  ;;  %v528_v2 = vadd.f32 %v488_v34, %v402_v24  ;;  %v510_v8 = vrot.slane %v494_v18, 2 }
 0x325   :  { %837 = vst [vmem:[#allocation1 + $0x21] ss:$4 sm:$0xff] %v794_v55  ;;  %v405_v26 = vadd.f32 %v1419_v12, %v380_v37  ;;  %v529_v6 = vadd.f32 %v504_v20, %v403_v50  ;;  %v530_v14 = vadd.f32 %v505_v0, %v404_v29  ;;  %v512_v55 = vrot.slane %v494_v18, 6 }
 0x326   :  { %839 = vst [vmem:[#allocation1 + $0x23] ss:$4 sm:$0xff] %v796_v10  ;;  %v511_v10 = vrot.slane %v494_v18, 4 }
 0x327   :  { %v531_v7 = vadd.f32 %v506_v1, %v405_v26 }
 0x328   :  { %v365_v30 = vpop.f32.mrf.mxu1  ;;  %v497_v50 = vpop.f32.mrf.mxu2 }
 0x329   :  { %v840_v11 = vld.sshfl [vmem:[#allocation1] sm:$0xff pattern:$0x73625140]  ;;  %v381_v41 = vrot.slane %v365_v30, 2  ;;  %v382_v3 = vrot.slane %v365_v30, 4  ;;  %v383_v4 = vrot.slane %v365_v30, 6  ;;  %v406_v42 = vadd.f32 %v1419_v12, %v365_v30 }
 0x32a   :  { %974 = vmatmul.msk.f32.gmra.mxu0 %vm129_vm1, %v840_v11 }
 0x32b   :  { %v407_v43 = vadd.f32 %v1419_v12, %v381_v41  ;;  %v408_v44 = vadd.f32 %v1419_v12, %v382_v3  ;;  %v409_v45 = vadd.f32 %v1419_v12, %v383_v4  ;;  %v532_v49 = vadd.f32 %v491_v36, %v406_v42 }
 0x32d   :  { %v841_v9 = vld.sshfl [vmem:[#allocation1 + $0x20] sm:$0xff pattern:$0x73625140]  ;;  %v533_v51 = vadd.f32 %v507_v46, %v407_v43  ;;  %v534_v52 = vadd.f32 %v508_v47, %v408_v44  ;;  %v535_v53 = vadd.f32 %v509_v48, %v409_v45 }
 0x330   :  { %v368_v13 = vpop.f32.mrf.mxu1 }
 0x331   :  { %v384_v16 = vrot.slane %v368_v13, 2  ;;  %v385_v17 = vrot.slane %v368_v13, 4  ;;  %v386_v61 = vrot.slane %v368_v13, 6  ;;  %v410_v21 = vadd.f32 %v1419_v12, %v368_v13 }
 0x332   :  { %975 = vmatmul.msk.f32.gmra.mxu0 %vm129_vm1, %v841_v9 }
 0x333   :  { %v411_v38 = vadd.f32 %v1419_v12, %v384_v16  ;;  %v412_v22 = vadd.f32 %v1419_v12, %v385_v17  ;;  %v413_v28 = vadd.f32 %v1419_v12, %v386_v61  ;;  %v536_v9 = vadd.f32 %v494_v18, %v410_v21 }
 0x335   :  { %v537_v27 = vadd.f32 %v510_v8, %v411_v38  ;;  %v538_v63 = vadd.f32 %v511_v10, %v412_v22  ;;  %v539_v34 = vadd.f32 %v512_v55, %v413_v28 }
 0x338   :  { %v371_v25 = vpop.f32.mrf.mxu1 }
 0x339   :  { %v387_v11 = vrot.slane %v371_v25, 2  ;;  %v388_v19 = vrot.slane %v371_v25, 4  ;;  %v389_v37 = vrot.slane %v371_v25, 6  ;;  %v414_v0 = vadd.f32 %v1419_v12, %v371_v25 }
 0x33b   :  { %v415_v1 = vadd.f32 %v1419_v12, %v387_v11  ;;  %v416_v41 = vadd.f32 %v1419_v12, %v388_v19  ;;  %v540_v36 = vadd.f32 %v497_v50, %v414_v0 }
 0x387   :  { %v867_v32 = vpop.f32.mrf.mxu0 }
 0x388   :  { %v883_v5 = vrot.slane %v867_v32, 2  ;;  %v884_v33 = vrot.slane %v867_v32, 4  ;;  %v885_v35 = vrot.slane %v867_v32, 6  ;;  %v907_v39 = vadd.f32 %v867_v32, %v528_v2 }
 0x389   :  { %v515_v32 = vrot.slane %v497_v50, 6 }
 0x38a   :  { %v908_v31 = vadd.f32 %v883_v5, %v529_v6  ;;  %v909_v62 = vadd.f32 %v884_v33, %v530_v14  ;;  %v910_v40 = vadd.f32 %v885_v35, %v531_v7  ;;  %924 = vst.msk [vmem:[#allocation2] sm:$0x3] %vm923_vm3, %v907_v39  ;;  %v417_v6 = vadd.f32 %v1419_v12, %v389_v37 }
 0x38b   :  { %v513_v14 = vrot.slane %v497_v50, 2  ;;  %v514_v7 = vrot.slane %v497_v50, 4 }
 0x38c   :  { %925 = vst.msk [vmem:[#allocation2 + $0x2] sm:$0x3] %vm923_vm3, %v908_v31  ;;  %v543_v35 = vadd.f32 %v515_v32, %v417_v6 }
 0x38d   :  { %926 = vst.msk [vmem:[#allocation2 + $0x4] sm:$0x3] %vm923_vm3, %v909_v62  ;;  %v541_v5 = vadd.f32 %v513_v14, %v415_v1  ;;  %v542_v33 = vadd.f32 %v514_v7, %v416_v41 }
 0x38e   :  { %927 = vst.msk [vmem:[#allocation2 + $0x6] sm:$0x3] %vm923_vm3, %v910_v40 }
 0x38f   :  { %v870_v54 = vpop.f32.mrf.mxu0 }
 0x390   :  { %v886_v23 = vrot.slane %v870_v54, 2  ;;  %v887_v56 = vrot.slane %v870_v54, 4  ;;  %v888_v57 = vrot.slane %v870_v54, 6  ;;  %v911_v58 = vadd.f32 %v870_v54, %v532_v49 }
 0x392   :  { %v912_v59 = vadd.f32 %v886_v23, %v533_v51  ;;  %v913_v60 = vadd.f32 %v887_v56, %v534_v52  ;;  %v914_v15 = vadd.f32 %v888_v57, %v535_v53  ;;  %928 = vst.msk [vmem:[#allocation2 + $0x8] sm:$0x3] %vm923_vm3, %v911_v58 }
 0x394   :  { %929 = vst.msk [vmem:[#allocation2 + $0xa] sm:$0x3] %vm923_vm3, %v912_v59 }
 0x395   :  { %930 = vst.msk [vmem:[#allocation2 + $0xc] sm:$0x3] %vm923_vm3, %v913_v60 }
 0x396   :  { %931 = vst.msk [vmem:[#allocation2 + $0xe] sm:$0x3] %vm923_vm3, %v914_v15 }
 0x3a7   :  { %v873_v24 = vpop.f32.mrf.mxu0 }
 0x3a8   :  { %v889_v29 = vrot.slane %v873_v24, 2  ;;  %v890_v30 = vrot.slane %v873_v24, 4  ;;  %v891_v26 = vrot.slane %v873_v24, 6  ;;  %v915_v20 = vadd.f32 %v873_v24, %v536_v9 }
 0x3aa   :  { %v916_v2 = vadd.f32 %v889_v29, %v537_v27  ;;  %v917_v3 = vadd.f32 %v890_v30, %v538_v63  ;;  %v918_v4 = vadd.f32 %v891_v26, %v539_v34  ;;  %932 = vst.msk [vmem:[#allocation2 + $0x10] sm:$0x3] %vm923_vm3, %v915_v20 }
 0x3ac   :  { %933 = vst.msk [vmem:[#allocation2 + $0x12] sm:$0x3] %vm923_vm3, %v916_v2 }
 0x3ad   :  { %934 = vst.msk [vmem:[#allocation2 + $0x14] sm:$0x3] %vm923_vm3, %v917_v3 }
 0x3ae   :  { %935 = vst.msk [vmem:[#allocation2 + $0x16] sm:$0x3] %vm923_vm3, %v918_v4 }
 0x3af   :  { %v876_v39 = vpop.f32.mrf.mxu0 }
 0x3b0   :  { %v892_v42 = vrot.slane %v876_v39, 2  ;;  %v893_v43 = vrot.slane %v876_v39, 4  ;;  %v894_v44 = vrot.slane %v876_v39, 6  ;;  %v919_v31 = vadd.f32 %v876_v39, %v540_v36 }
 0x3b2   :  { %v920_v12 = vadd.f32 %v892_v42, %v541_v5  ;;  %v921_v62 = vadd.f32 %v893_v43, %v542_v33  ;;  %v922_v40 = vadd.f32 %v894_v44, %v543_v35  ;;  %936 = vst.msk [vmem:[#allocation2 + $0x18] sm:$0x3] %vm923_vm3, %v919_v31 }
 0x3b4   :  { %937 = vst.msk [vmem:[#allocation2 + $0x1a] sm:$0x3] %vm923_vm3, %v920_v12 }
 0x3b5   :  { %938 = vst.msk [vmem:[#allocation2 + $0x1c] sm:$0x3] %vm923_vm3, %v921_v62 }
 0x3b6   :  { %939 = vst.msk [vmem:[#allocation2 + $0x1e] sm:$0x3] %vm923_vm3, %v922_v40 }
 0x3b7   :  { %952 = dma.vmem_to_hbm [thread:$0]  %s945_s6, 512, %s947_s9, [#allocation3], %s1027_s10, %s1027_s10, %s1028_s11  }
 0x3b8   :  { %1019 = dma.done.wait [#allocation3], 512  }
 0x3b9   :  { %1020 = vsyncadd [#allocation3], 4294966784 }
 0x3ba   :  { %957 = vsyncpa [#allocation3], 1 }

</bundles_post_ra>
